<compile_context>
chip_gen: v7x
topology: tpu7x:2x2x1
jax: 0.10.0
libtpu: 0.0.40
codegen_flags: <defaults>
</compile_context>

<pallas_src>
import jax
import jax.numpy as jnp
from jax.experimental import pallas as pl
from jax.experimental.pallas import tpu as pltpu


# ---------------------------------------------------------------------------
# Fused conv3d kernel: per grid step (n, do, co, kd) it consumes one padded
# input depth plane and one weight depth-slice and accumulates all kH*kW taps
# into an f32 VMEM accumulator; the output block (Ho*Wo, tn) stays resident
# across the kd reduction axis.
# ---------------------------------------------------------------------------
def _make_conv_kernel(kD, kH, kW, sH, sW, Ho, Wo, Ci, has_bias):
    m_tile = Ho * Wo

    def body(x_ref, w_ref, b_ref, o_ref, acc_ref):
        # x_ref  : (1, 1, Hp, Wp, Ci)   padded input plane at depth do*sD + kd
        # w_ref  : (1, kH, kW, Ci, tn)  weight slice for this kd / C_out tile
        # b_ref  : (1, tn) or None
        # o_ref  : (1, 1, Ho*Wo, tn)
        # acc_ref: (Ho*Wo, tn) f32 scratch
        kd = pl.program_id(3)

        @pl.when(kd == 0)
        def _init():
            if b_ref is None:
                acc_ref[...] = jnp.zeros_like(acc_ref)
            else:
                acc_ref[...] = jnp.broadcast_to(
                    b_ref[...].astype(jnp.float32), acc_ref.shape)

        # Static unrolled loop over the in-plane taps: each tap is a shifted
        # (and, for stride > 1, strided) (Ho, Wo, Ci) window of the plane
        # feeding a (Ho*Wo, Ci) x (Ci, tn) MXU matmul.
        acc = None
        for kh in range(kH):
            h_idx = (slice(kh, kh + Ho) if sH == 1
                     else pl.ds(kh, Ho, stride=sH))
            for kw in range(kW):
                w_idx = (slice(kw, kw + Wo) if sW == 1
                         else pl.ds(kw, Wo, stride=sW))
                patch = x_ref[0, 0, h_idx, w_idx, :]            # (Ho, Wo, Ci)
                patch = patch.reshape(m_tile, Ci)
                tap_w = w_ref[0, kh, kw, :, :]                  # (Ci, tn)
                contrib = jnp.dot(patch, tap_w,
                                  preferred_element_type=jnp.float32)
                acc = contrib if acc is None else acc + contrib
        acc_ref[...] += acc

        @pl.when(kd == kD - 1)
        def _finalize():
            o_ref[0, 0, :, :] = acc_ref[...].astype(o_ref.dtype)

    if has_bias:
        def kernel(x_ref, w_ref, b_ref, o_ref, acc_ref):
            body(x_ref, w_ref, b_ref, o_ref, acc_ref)
    else:
        def kernel(x_ref, w_ref, o_ref, acc_ref):
            body(x_ref, w_ref, None, o_ref, acc_ref)
    return kernel


def _fused_conv3d_ndhwc(xp, w_r, b_r, *, stride, out_dhw, out_dtype):
    """xp: (N, Dp, Hp, Wp, Ci) padded NDHWC input; w_r: (kD, kH, kW, Ci, Co_pad);
    b_r: (1, Co_pad) or None.  Returns (N, Do, Ho*Wo, Co_pad)."""
    N, Dp, Hp, Wp, Ci = xp.shape
    kD, kH, kW, _, Co_pad = w_r.shape
    sD, sH, sW = stride
    Do, Ho, Wo = out_dhw
    m_tile = Ho * Wo
    has_bias = b_r is not None

    # Lane-dense C_out tile (multiple of 128); bounded so the weight block +
    # accumulator + double-buffered planes stay well inside v7x's 64 MiB VMEM.
    tn = 256 if Co_pad % 256 == 0 else 128
    n_co = Co_pad // tn

    kernel = _make_conv_kernel(kD, kH, kW, sH, sW, Ho, Wo, Ci, has_bias)

    in_specs = [
        # One padded input depth plane per step, channels-last (Ci on lanes).
        pl.BlockSpec((1, 1, Hp, Wp, Ci),
                     lambda n, d, co, kd: (n, d * sD + kd, 0, 0, 0)),
        # Weight depth slice for this kd / C_out tile.
        pl.BlockSpec((1, kH, kW, Ci, tn),
                     lambda n, d, co, kd: (kd, 0, 0, 0, co)),
    ]
    operands = [xp, w_r]
    if has_bias:
        in_specs.append(pl.BlockSpec((1, tn), lambda n, d, co, kd: (0, co)))
        operands.append(b_r)

    taps = kD * kH * kW
    flops = 2 * N * Do * m_tile * Ci * taps * Co_pad
    bytes_accessed = (
        N * Do * n_co * kD * Hp * Wp * Ci * xp.dtype.itemsize          # x reads
        + N * Do * taps * Ci * Co_pad * w_r.dtype.itemsize             # w reads
        + N * Do * m_tile * Co_pad * jnp.dtype(out_dtype).itemsize)    # out writes

    return pl.pallas_call(
        kernel,
        out_shape=jax.ShapeDtypeStruct((N, Do, m_tile, Co_pad), out_dtype),
        grid_spec=pltpu.PrefetchScalarGridSpec(
            num_scalar_prefetch=0,
            grid=(N, Do, n_co, kD),                      # reduction (kD) last
            in_specs=in_specs,
            out_specs=pl.BlockSpec((1, 1, m_tile, tn),
                                   lambda n, d, co, kd: (n, d, 0, co)),
            scratch_shapes=[pltpu.VMEM((m_tile, tn), jnp.float32)],
        ),
        compiler_params=pltpu.CompilerParams(
            dimension_semantics=("parallel", "parallel", "parallel", "arbitrary"),
            vmem_limit_bytes=48 * 1024 * 1024,
        ),
        cost_estimate=pl.CostEstimate(
            flops=flops, transcendentals=0, bytes_accessed=bytes_accessed),
    )(*operands)


# ---------------------------------------------------------------------------
# SamePadConv3d: replicate-pad so output spatial matches the stride-"same"
# convention of the PyTorch module, then valid Conv3d.
# ---------------------------------------------------------------------------
class SamePadConv3dPallas:
    _PAD_MODE = {'replicate': 'edge', 'constant': 'constant', 'reflect': 'reflect'}

    def __init__(self, in_channels, out_channels, kernel_size, stride=1,
                 bias=True, padding_type='replicate', key=None,
                 compute_dtype=jnp.float32):
        if isinstance(kernel_size, int):
            kernel_size = (kernel_size,) * 3
        if isinstance(stride, int):
            stride = (stride,) * 3
        self.in_channels = in_channels
        self.out_channels = out_channels
        self.kernel_size = tuple(kernel_size)
        self.stride = tuple(stride)
        self.has_bias = bool(bias)
        self.compute_dtype = compute_dtype

        # PyTorch: total_pad = k - s; extra padding goes on the "before" side.
        # max(0, .) guards stride > kernel (negative pad would error in jnp.pad).
        total_pad = tuple(max(0, k - s)
                          for k, s in zip(self.kernel_size, self.stride))
        self.pads = tuple((p // 2 + p % 2, p // 2) for p in total_pad)   # (D,H,W)
        assert padding_type in self._PAD_MODE, padding_type
        self.pad_mode = self._PAD_MODE[padding_type]

        # Deterministic synthetic parameters (shapes match nn.Conv3d).
        key = jax.random.PRNGKey(0) if key is None else key
        kw_, kb_ = jax.random.split(key)
        kD, kH, kW = self.kernel_size
        self.weight = 0.1 * jax.random.normal(
            kw_, (out_channels, in_channels, kD, kH, kW), jnp.float32)
        self.bias = (0.1 * jax.random.normal(kb_, (out_channels,), jnp.float32)
                     if bias else None)

        # Kernel-side parameter layout (done once):
        #   weight (Co, Ci, kD, kH, kW) -> (kD, kH, kW, Ci, Co_pad), C_out
        #   zero-padded to a lane-dense multiple of 128; bias -> (1, Co_pad).
        self.co_pad = ((out_channels + 127) // 128) * 128
        pad_c = self.co_pad - out_channels
        w_r = jnp.transpose(self.weight, (2, 3, 4, 1, 0))
        self.w_r = jnp.pad(w_r, ((0, 0),) * 4 + ((0, pad_c),)).astype(compute_dtype)
        self.b_r = (jnp.pad(self.bias, (0, pad_c)).reshape(1, -1)
                    if bias else None)

    def __call__(self, x):
        # x: (N, C_in, D, H, W)
        N = x.shape[0]
        kD, kH, kW = self.kernel_size
        sD, sH, sW = self.stride

        # Replicate pad, then channels-last so C_in sits on lanes for the MXU.
        xp = jnp.pad(x, ((0, 0), (0, 0)) + self.pads, mode=self.pad_mode)
        xp = jnp.transpose(xp, (0, 2, 3, 4, 1)).astype(self.compute_dtype)
        _, Dp, Hp, Wp, _ = xp.shape
        Do = (Dp - kD) // sD + 1
        Ho = (Hp - kH) // sH + 1
        Wo = (Wp - kW) // sW + 1

        out = _fused_conv3d_ndhwc(
            xp, self.w_r, self.b_r, stride=self.stride,
            out_dhw=(Do, Ho, Wo), out_dtype=x.dtype)     # (N, Do, Ho*Wo, Co_pad)

        out = out[..., :self.out_channels].reshape(
            N, Do, Ho, Wo, self.out_channels)
        # TODO(synk): downstream VQGAN blocks could consume NDHWC directly and
        # skip this transpose; NCDHW is kept to match the PyTorch module.
        return jnp.transpose(out, (0, 4, 1, 2, 3))       # (N, C_out, Do, Ho, Wo)


def _reference(conv, x):
    xp = jnp.pad(x, ((0, 0), (0, 0)) + conv.pads, mode=conv.pad_mode)
    y = jax.lax.conv_general_dilated(
        xp, conv.weight, window_strides=conv.stride, padding='VALID',
        dimension_numbers=('NCDHW', 'OIDHW', 'NCDHW'))
    if conv.bias is not None:
        y = y + conv.bias[None, :, None, None, None]
    return y


if __name__ == "__main__":
    key = jax.random.PRNGKey(0)
    kx1, kp1, kx2, kp2 = jax.random.split(key, 4)

    # Case 1: 3x3x3, stride 1, with bias.  (N=2, C_in=4 -> C_out=8, 8^3 volume)
    N, Cin, Cout, S = 2, 4, 8, 8
    x1 = jax.random.normal(kx1, (N, Cin, S, S, S), jnp.float32)
    conv1 = SamePadConv3dPallas(Cin, Cout, kernel_size=3, stride=1,
                                bias=True, padding_type='replicate', key=kp1)
    y1 = jax.block_until_ready(conv1(x1))
    y1_ref = _reference(conv1, x1)
    assert y1.shape == y1_ref.shape == (N, Cout, S, S, S)
    assert jnp.allclose(y1, y1_ref, atol=5e-4, rtol=5e-4)

    # Case 2: even 4x4x4 kernel, stride 1, bias=False (asymmetric replicate pad,
    # bias operand skipped inside the kernel).
    x2 = jax.random.normal(kx2, (N, Cin, S, S, S), jnp.float32)
    conv2 = SamePadConv3dPallas(Cin, Cout, kernel_size=4, stride=1,
                                bias=False, padding_type='replicate', key=kp2)
    y2 = jax.block_until_ready(conv2(x2))
    y2_ref = _reference(conv2, x2)
    assert y2.shape == y2_ref.shape == (N, Cout, S, S, S)
    assert jnp.allclose(y2, y2_ref, atol=5e-4, rtol=5e-4)

    print("KERNEL_OK")
</pallas_src>

<mosaic_0001>
module attributes {stable_mosaic.version = 11 : i64} {
  func.func @kernel(%arg0: i32, %arg1: i32, %arg2: i32, %arg3: i32, %arg4: memref<1x1x10x10x4xf32, #tpu.memory_space<vmem>>, %arg5: memref<1x3x3x4x128xf32, #tpu.memory_space<vmem>>, %arg6: memref<1x128xf32, #tpu.memory_space<vmem>>, %arg7: memref<1x1x64x128xf32, #tpu.memory_space<vmem>>, %arg8: memref<64x128xf32, #tpu.memory_space<vmem>>) attributes {dimension_semantics = [#tpu.dimension_semantics<parallel>, #tpu.dimension_semantics<parallel>, #tpu.dimension_semantics<parallel>, #tpu.dimension_semantics<arbitrary>], iteration_bounds = array<i64: 2, 8, 1, 3>, scalar_prefetch = 0 : i64, scratch_operands = 1 : i64, tpu.core_type = #tpu.core_type<tc>, window_params = [{transform_indices = @transform_0, window_bounds = array<i64: 1, 1, 10, 10, 4>}, {transform_indices = @transform_1, window_bounds = array<i64: 1, 3, 3, 4, 128>}, {transform_indices = @transform_2, window_bounds = array<i64: 1, 128>}, {transform_indices = @transform_3, window_bounds = array<i64: 1, 1, 64, 128>}]} {
    %c0_i32 = arith.constant 0 : i32
    %0 = arith.cmpi eq, %arg3, %c0_i32 : i32
    %1 = arith.extui %0 : i1 to i32
    %c0_i32_0 = arith.constant 0 : i32
    %2 = arith.cmpi ne, %1, %c0_i32_0 : i32
    scf.if %2 {
      %c0_101 = arith.constant 0 : index
      %c0_102 = arith.constant 0 : index
      %71 = vector.load %arg6[%c0_101, %c0_102] : memref<1x128xf32, #tpu.memory_space<vmem>>, vector<1x128xf32>
      %72 = vector.shape_cast %71 : vector<1x128xf32> to vector<1x128xf32>
      %73 = vector.broadcast %72 : vector<1x128xf32> to vector<64x128xf32>
      %c0_103 = arith.constant 0 : index
      %c0_104 = arith.constant 0 : index
      %74 = vector.load %arg8[%c0_103, %c0_104] : memref<64x128xf32, #tpu.memory_space<vmem>>, vector<64x128xf32>
      tpu.vector_store %arg8[%c0_103, %c0_104], %73 {strides = array<i32>} : memref<64x128xf32, #tpu.memory_space<vmem>>, vector<64x128xf32>,
    } else {
    }
    %c0 = arith.constant 0 : index
    %c0_1 = arith.constant 0 : index
    %c0_2 = arith.constant 0 : index
    %c0_3 = arith.constant 0 : index
    %c0_4 = arith.constant 0 : index
    %3 = vector.load %arg4[%c0, %c0_1, %c0_2, %c0_3, %c0_4] : memref<1x1x10x10x4xf32, #tpu.memory_space<vmem>>, vector<1x1x8x8x4xf32>
    %4 = vector.shape_cast %3 : vector<1x1x8x8x4xf32> to vector<8x8x4xf32>
    %5 = vector.shape_cast %4 : vector<8x8x4xf32> to vector<64x4xf32>
    %c0_5 = arith.constant 0 : index
    %c0_6 = arith.constant 0 : index
    %c0_7 = arith.constant 0 : index
    %c0_8 = arith.constant 0 : index
    %c0_9 = arith.constant 0 : index
    %6 = vector.load %arg5[%c0_5, %c0_6, %c0_7, %c0_8, %c0_9] : memref<1x3x3x4x128xf32, #tpu.memory_space<vmem>>, vector<1x1x1x4x128xf32>
    %7 = vector.shape_cast %6 : vector<1x1x1x4x128xf32> to vector<4x128xf32>
    %cst = arith.constant dense<0.000000e+00> : vector<64x128xf32>
    %8 = tpu.matmul %5, %7, %cst {dimension_numbers = #tpu.dot_dimension_numbers<[1], [0], [0], [1], [0, 0, 1, 1], [], []>} : vector<64x4xf32>, vector<4x128xf32>, vector<64x128xf32> -> vector<64x128xf32>
    %c0_10 = arith.constant 0 : index
    %c0_11 = arith.constant 0 : index
    %c0_12 = arith.constant 0 : index
    %c1 = arith.constant 1 : index
    %c0_13 = arith.constant 0 : index
    %9 = vector.load %arg4[%c0_10, %c0_11, %c0_12, %c1, %c0_13] : memref<1x1x10x10x4xf32, #tpu.memory_space<vmem>>, vector<1x1x8x8x4xf32>
    %10 = vector.shape_cast %9 : vector<1x1x8x8x4xf32> to vector<8x8x4xf32>
    %11 = vector.shape_cast %10 : vector<8x8x4xf32> to vector<64x4xf32>
    %c0_14 = arith.constant 0 : index
    %c0_15 = arith.constant 0 : index
    %c1_16 = arith.constant 1 : index
    %c0_17 = arith.constant 0 : index
    %c0_18 = arith.constant 0 : index
    %12 = vector.load %arg5[%c0_14, %c0_15, %c1_16, %c0_17, %c0_18] : memref<1x3x3x4x128xf32, #tpu.memory_space<vmem>>, vector<1x1x1x4x128xf32>
    %13 = vector.shape_cast %12 : vector<1x1x1x4x128xf32> to vector<4x128xf32>
    %cst_19 = arith.constant dense<0.000000e+00> : vector<64x128xf32>
    %14 = tpu.matmul %11, %13, %cst_19 {dimension_numbers = #tpu.dot_dimension_numbers<[1], [0], [0], [1], [0, 0, 1, 1], [], []>} : vector<64x4xf32>, vector<4x128xf32>, vector<64x128xf32> -> vector<64x128xf32>
    %15 = arith.addf %8, %14 : vector<64x128xf32>
    %c0_20 = arith.constant 0 : index
    %c0_21 = arith.constant 0 : index
    %c0_22 = arith.constant 0 : index
    %c2 = arith.constant 2 : index
    %c0_23 = arith.constant 0 : index
    %16 = vector.load %arg4[%c0_20, %c0_21, %c0_22, %c2, %c0_23] : memref<1x1x10x10x4xf32, #tpu.memory_space<vmem>>, vector<1x1x8x8x4xf32>
    %17 = vector.shape_cast %16 : vector<1x1x8x8x4xf32> to vector<8x8x4xf32>
    %18 = vector.shape_cast %17 : vector<8x8x4xf32> to vector<64x4xf32>
    %c0_24 = arith.constant 0 : index
    %c0_25 = arith.constant 0 : index
    %c2_26 = arith.constant 2 : index
    %c0_27 = arith.constant 0 : index
    %c0_28 = arith.constant 0 : index
    %19 = vector.load %arg5[%c0_24, %c0_25, %c2_26, %c0_27, %c0_28] : memref<1x3x3x4x128xf32, #tpu.memory_space<vmem>>, vector<1x1x1x4x128xf32>
    %20 = vector.shape_cast %19 : vector<1x1x1x4x128xf32> to vector<4x128xf32>
    %cst_29 = arith.constant dense<0.000000e+00> : vector<64x128xf32>
    %21 = tpu.matmul %18, %20, %cst_29 {dimension_numbers = #tpu.dot_dimension_numbers<[1], [0], [0], [1], [0, 0, 1, 1], [], []>} : vector<64x4xf32>, vector<4x128xf32>, vector<64x128xf32> -> vector<64x128xf32>
    %22 = arith.addf %15, %21 : vector<64x128xf32>
    %c0_30 = arith.constant 0 : index
    %c0_31 = arith.constant 0 : index
    %c1_32 = arith.constant 1 : index
    %c0_33 = arith.constant 0 : index
    %c0_34 = arith.constant 0 : index
    %23 = vector.load %arg4[%c0_30, %c0_31, %c1_32, %c0_33, %c0_34] : memref<1x1x10x10x4xf32, #tpu.memory_space<vmem>>, vector<1x1x8x8x4xf32>
    %24 = vector.shape_cast %23 : vector<1x1x8x8x4xf32> to vector<8x8x4xf32>
    %25 = vector.shape_cast %24 : vector<8x8x4xf32> to vector<64x4xf32>
    %c0_35 = arith.constant 0 : index
    %c1_36 = arith.constant 1 : index
    %c0_37 = arith.constant 0 : index
    %c0_38 = arith.constant 0 : index
    %c0_39 = arith.constant 0 : index
    %26 = vector.load %arg5[%c0_35, %c1_36, %c0_37, %c0_38, %c0_39] : memref<1x3x3x4x128xf32, #tpu.memory_space<vmem>>, vector<1x1x1x4x128xf32>
    %27 = vector.shape_cast %26 : vector<1x1x1x4x128xf32> to vector<4x128xf32>
    %cst_40 = arith.constant dense<0.000000e+00> : vector<64x128xf32>
    %28 = tpu.matmul %25, %27, %cst_40 {dimension_numbers = #tpu.dot_dimension_numbers<[1], [0], [0], [1], [0, 0, 1, 1], [], []>} : vector<64x4xf32>, vector<4x128xf32>, vector<64x128xf32> -> vector<64x128xf32>
    %29 = arith.addf %22, %28 : vector<64x128xf32>
    %c0_41 = arith.constant 0 : index
    %c0_42 = arith.constant 0 : index
    %c1_43 = arith.constant 1 : index
    %c1_44 = arith.constant 1 : index
    %c0_45 = arith.constant 0 : index
    %30 = vector.load %arg4[%c0_41, %c0_42, %c1_43, %c1_44, %c0_45] : memref<1x1x10x10x4xf32, #tpu.memory_space<vmem>>, vector<1x1x8x8x4xf32>
    %31 = vector.shape_cast %30 : vector<1x1x8x8x4xf32> to vector<8x8x4xf32>
    %32 = vector.shape_cast %31 : vector<8x8x4xf32> to vector<64x4xf32>
    %c0_46 = arith.constant 0 : index
    %c1_47 = arith.constant 1 : index
    %c1_48 = arith.constant 1 : index
    %c0_49 = arith.constant 0 : index
    %c0_50 = arith.constant 0 : index
    %33 = vector.load %arg5[%c0_46, %c1_47, %c1_48, %c0_49, %c0_50] : memref<1x3x3x4x128xf32, #tpu.memory_space<vmem>>, vector<1x1x1x4x128xf32>
    %34 = vector.shape_cast %33 : vector<1x1x1x4x128xf32> to vector<4x128xf32>
    %cst_51 = arith.constant dense<0.000000e+00> : vector<64x128xf32>
    %35 = tpu.matmul %32, %34, %cst_51 {dimension_numbers = #tpu.dot_dimension_numbers<[1], [0], [0], [1], [0, 0, 1, 1], [], []>} : vector<64x4xf32>, vector<4x128xf32>, vector<64x128xf32> -> vector<64x128xf32>
    %36 = arith.addf %29, %35 : vector<64x128xf32>
    %c0_52 = arith.constant 0 : index
    %c0_53 = arith.constant 0 : index
    %c1_54 = arith.constant 1 : index
    %c2_55 = arith.constant 2 : index
    %c0_56 = arith.constant 0 : index
    %37 = vector.load %arg4[%c0_52, %c0_53, %c1_54, %c2_55, %c0_56] : memref<1x1x10x10x4xf32, #tpu.memory_space<vmem>>, vector<1x1x8x8x4xf32>
    %38 = vector.shape_cast %37 : vector<1x1x8x8x4xf32> to vector<8x8x4xf32>
    %39 = vector.shape_cast %38 : vector<8x8x4xf32> to vector<64x4xf32>
    %c0_57 = arith.constant 0 : index
    %c1_58 = arith.constant 1 : index
    %c2_59 = arith.constant 2 : index
    %c0_60 = arith.constant 0 : index
    %c0_61 = arith.constant 0 : index
    %40 = vector.load %arg5[%c0_57, %c1_58, %c2_59, %c0_60, %c0_61] : memref<1x3x3x4x128xf32, #tpu.memory_space<vmem>>, vector<1x1x1x4x128xf32>
    %41 = vector.shape_cast %40 : vector<1x1x1x4x128xf32> to vector<4x128xf32>
    %cst_62 = arith.constant dense<0.000000e+00> : vector<64x128xf32>
    %42 = tpu.matmul %39, %41, %cst_62 {dimension_numbers = #tpu.dot_dimension_numbers<[1], [0], [0], [1], [0, 0, 1, 1], [], []>} : vector<64x4xf32>, vector<4x128xf32>, vector<64x128xf32> -> vector<64x128xf32>
    %43 = arith.addf %36, %42 : vector<64x128xf32>
    %c0_63 = arith.constant 0 : index
    %c0_64 = arith.constant 0 : index
    %c2_65 = arith.constant 2 : index
    %c0_66 = arith.constant 0 : index
    %c0_67 = arith.constant 0 : index
    %44 = vector.load %arg4[%c0_63, %c0_64, %c2_65, %c0_66, %c0_67] : memref<1x1x10x10x4xf32, #tpu.memory_space<vmem>>, vector<1x1x8x8x4xf32>
    %45 = vector.shape_cast %44 : vector<1x1x8x8x4xf32> to vector<8x8x4xf32>
    %46 = vector.shape_cast %45 : vector<8x8x4xf32> to vector<64x4xf32>
    %c0_68 = arith.constant 0 : index
    %c2_69 = arith.constant 2 : index
    %c0_70 = arith.constant 0 : index
    %c0_71 = arith.constant 0 : index
    %c0_72 = arith.constant 0 : index
    %47 = vector.load %arg5[%c0_68, %c2_69, %c0_70, %c0_71, %c0_72] : memref<1x3x3x4x128xf32, #tpu.memory_space<vmem>>, vector<1x1x1x4x128xf32>
    %48 = vector.shape_cast %47 : vector<1x1x1x4x128xf32> to vector<4x128xf32>
    %cst_73 = arith.constant dense<0.000000e+00> : vector<64x128xf32>
    %49 = tpu.matmul %46, %48, %cst_73 {dimension_numbers = #tpu.dot_dimension_numbers<[1], [0], [0], [1], [0, 0, 1, 1], [], []>} : vector<64x4xf32>, vector<4x128xf32>, vector<64x128xf32> -> vector<64x128xf32>
    %50 = arith.addf %43, %49 : vector<64x128xf32>
    %c0_74 = arith.constant 0 : index
    %c0_75 = arith.constant 0 : index
    %c2_76 = arith.constant 2 : index
    %c1_77 = arith.constant 1 : index
    %c0_78 = arith.constant 0 : index
    %51 = vector.load %arg4[%c0_74, %c0_75, %c2_76, %c1_77, %c0_78] : memref<1x1x10x10x4xf32, #tpu.memory_space<vmem>>, vector<1x1x8x8x4xf32>
    %52 = vector.shape_cast %51 : vector<1x1x8x8x4xf32> to vector<8x8x4xf32>
    %53 = vector.shape_cast %52 : vector<8x8x4xf32> to vector<64x4xf32>
    %c0_79 = arith.constant 0 : index
    %c2_80 = arith.constant 2 : index
    %c1_81 = arith.constant 1 : index
    %c0_82 = arith.constant 0 : index
    %c0_83 = arith.constant 0 : index
    %54 = vector.load %arg5[%c0_79, %c2_80, %c1_81, %c0_82, %c0_83] : memref<1x3x3x4x128xf32, #tpu.memory_space<vmem>>, vector<1x1x1x4x128xf32>
    %55 = vector.shape_cast %54 : vector<1x1x1x4x128xf32> to vector<4x128xf32>
    %cst_84 = arith.constant dense<0.000000e+00> : vector<64x128xf32>
    %56 = tpu.matmul %53, %55, %cst_84 {dimension_numbers = #tpu.dot_dimension_numbers<[1], [0], [0], [1], [0, 0, 1, 1], [], []>} : vector<64x4xf32>, vector<4x128xf32>, vector<64x128xf32> -> vector<64x128xf32>
    %57 = arith.addf %50, %56 : vector<64x128xf32>
    %c0_85 = arith.constant 0 : index
    %c0_86 = arith.constant 0 : index
    %c2_87 = arith.constant 2 : index
    %c2_88 = arith.constant 2 : index
    %c0_89 = arith.constant 0 : index
    %58 = vector.load %arg4[%c0_85, %c0_86, %c2_87, %c2_88, %c0_89] : memref<1x1x10x10x4xf32, #tpu.memory_space<vmem>>, vector<1x1x8x8x4xf32>
    %59 = vector.shape_cast %58 : vector<1x1x8x8x4xf32> to vector<8x8x4xf32>
    %60 = vector.shape_cast %59 : vector<8x8x4xf32> to vector<64x4xf32>
    %c0_90 = arith.constant 0 : index
    %c2_91 = arith.constant 2 : index
    %c2_92 = arith.constant 2 : index
    %c0_93 = arith.constant 0 : index
    %c0_94 = arith.constant 0 : index
    %61 = vector.load %arg5[%c0_90, %c2_91, %c2_92, %c0_93, %c0_94] : memref<1x3x3x4x128xf32, #tpu.memory_space<vmem>>, vector<1x1x1x4x128xf32>
    %62 = vector.shape_cast %61 : vector<1x1x1x4x128xf32> to vector<4x128xf32>
    %cst_95 = arith.constant dense<0.000000e+00> : vector<64x128xf32>
    %63 = tpu.matmul %60, %62, %cst_95 {dimension_numbers = #tpu.dot_dimension_numbers<[1], [0], [0], [1], [0, 0, 1, 1], [], []>} : vector<64x4xf32>, vector<4x128xf32>, vector<64x128xf32> -> vector<64x128xf32>
    %64 = arith.addf %57, %63 : vector<64x128xf32>
    %c0_96 = arith.constant 0 : index
    %c0_97 = arith.constant 0 : index
    %65 = vector.load %arg8[%c0_96, %c0_97] : memref<64x128xf32, #tpu.memory_space<vmem>>, vector<64x128xf32>
    %66 = arith.addf %65, %64 : vector<64x128xf32>
    %c0_98 = arith.constant 0 : index
    %c0_99 = arith.constant 0 : index
    %67 = vector.load %arg8[%c0_98, %c0_99] : memref<64x128xf32, #tpu.memory_space<vmem>>, vector<64x128xf32>
    tpu.vector_store %arg8[%c0_98, %c0_99], %66 {strides = array<i32>} : memref<64x128xf32, #tpu.memory_space<vmem>>, vector<64x128xf32>,
    %c2_i32 = arith.constant 2 : i32
    %68 = arith.cmpi eq, %arg3, %c2_i32 : i32
    %69 = arith.extui %68 : i1 to i32
    %c0_i32_100 = arith.constant 0 : i32
    %70 = arith.cmpi ne, %69, %c0_i32_100 : i32
    scf.if %70 {
      %c0_101 = arith.constant 0 : index
      %c0_102 = arith.constant 0 : index
      %71 = vector.load %arg8[%c0_101, %c0_102] : memref<64x128xf32, #tpu.memory_space<vmem>>, vector<64x128xf32>
      %c0_103 = arith.constant 0 : index
      %c0_104 = arith.constant 0 : index
      %c0_105 = arith.constant 0 : index
      %c0_106 = arith.constant 0 : index
      %72 = vector.load %arg7[%c0_103, %c0_104, %c0_105, %c0_106] : memref<1x1x64x128xf32, #tpu.memory_space<vmem>>, vector<1x1x64x128xf32>
      %73 = vector.shape_cast %72 : vector<1x1x64x128xf32> to vector<64x128xf32>
      %74 = vector.shape_cast %71 : vector<64x128xf32> to vector<1x1x64x128xf32>
      tpu.vector_store %arg7[%c0_103, %c0_104, %c0_105, %c0_106], %74 {strides = array<i32>} : memref<1x1x64x128xf32, #tpu.memory_space<vmem>>, vector<1x1x64x128xf32>,
    } else {
    }
    return
  }
  func.func @transform_0(%arg0: i32, %arg1: i32, %arg2: i32, %arg3: i32) -> (i32, i32, i32, i32, i32) {
    %c1_i32 = arith.constant 1 : i32
    %0 = arith.muli %arg1, %c1_i32 : i32
    %1 = arith.addi %0, %arg3 : i32
    %c0_i32 = arith.constant 0 : i32
    %c0_i32_0 = arith.constant 0 : i32
    %c0_i32_1 = arith.constant 0 : i32
    %c0_i32_2 = arith.constant 0 : i32
    return %arg0, %1, %c0_i32, %c0_i32_0, %c0_i32_1 : i32, i32, i32, i32, i32
  }
  func.func @transform_1(%arg0: i32, %arg1: i32, %arg2: i32, %arg3: i32) -> (i32, i32, i32, i32, i32) {
    %c0_i32 = arith.constant 0 : i32
    %c0_i32_0 = arith.constant 0 : i32
    %c0_i32_1 = arith.constant 0 : i32
    %c0_i32_2 = arith.constant 0 : i32
    return %arg3, %c0_i32, %c0_i32_0, %c0_i32_1, %arg2 : i32, i32, i32, i32, i32
  }
  func.func @transform_2(%arg0: i32, %arg1: i32, %arg2: i32, %arg3: i32) -> (i32, i32) {
    %c0_i32 = arith.constant 0 : i32
    %c0_i32_0 = arith.constant 0 : i32
    return %c0_i32, %arg2 : i32, i32
  }
  func.func @transform_3(%arg0: i32, %arg1: i32, %arg2: i32, %arg3: i32) -> (i32, i32, i32, i32) {
    %c0_i32 = arith.constant 0 : i32
    %c0_i32_0 = arith.constant 0 : i32
    return %arg0, %arg1, %c0_i32, %arg2 : i32, i32, i32, i32
  }
}

</mosaic_0001>

<bundles_post_ra>
// kernel: tpu_custom_call.1
= control target key start
LH: loop header
LB: loop body
LE: loop exit
PB: predicated region body
PF: predicated region fallthrough
CT: control target
= control target key end

     0   :  { %8 = vsyncpa [#allocation4], 0  ;;  %s2852_s0 = inlined_call_operand.vmem [shape: f32[2,10,10,10,4], index: 0, kind: input, shape index: {}]   ;;  %s2853_s1 = inlined_call_operand.vmem [shape: f32[3,3,3,4,128], index: 1, kind: input, shape index: {}]   ;;  %s2854_s2 = inlined_call_operand.vmem [shape: f32[1,128], index: 2, kind: input, shape index: {}]   ;;  %s2855_s3 = inlined_call_operand.hbm [shape: f32[2,8,64,128], index: 3, kind: output, shape index: {}]  }
   0x1   :  { %10 = vsyncpa [#allocation4 + $0x1], 0  ;;  %s2462_s12 = smov 0   ;;  %s2464_s13 = smov 0  }
   0x2   :  { %s2466_s14 = smov 0   ;;  %s2468_s15 = smov 0  }
   0x3   :  { %s2470_s16 = smov 0   ;;  %s2472_s17 = smov 0  }
   0x4   :  { %s2474_s18 = smov 0   ;;  %s2476_s19 = smov 0  }
   0x5   :  { %s2478_s20 = smov 0   ;;  %s2480_s21 = smov 0  }
   0x6 LB: > { %2861 = sst [smem:[#allocation6_spill]] %s2429_s19  ;;  %s1807_s22 = sadd.s32 4294967295, %s2437_s21   ;;  %s2437_s21 = sphi %s2480_s21, %s16_s21   ;;  %s2433_s20 = sphi %s2478_s20, %s2873_s20   ;;  %s2429_s19 = sphi %s2476_s19, %s2872_s19   ;;  %s2425_s18 = sphi %s2474_s18, %s2878_s18   ;;  %s2421_s17 = sphi %s2472_s17, %s2870_s17   ;;  %s2417_s16 = sphi %s2470_s16, %s2869_s16   ;;  %s2413_s15 = sphi %s2468_s15, %s2877_s15   ;;  %s2409_s14 = sphi %s2466_s14, %s2876_s14   ;;  %s2405_s13 = sphi %s2464_s13, %s2875_s13   ;;  %s2401_s12 = sphi %s2462_s12, %s2874_s12  }
   0x7   : > { %2862 = sst [smem:[#allocation7_spill]] %s2433_s20  ;;  %s1808_s23 = sadd.s32 4294967294, %s2437_s21  }
   0x8   : > { %s31_s24 = sadd.s32 1, %s2425_s18  ;;  %s38_s25 = sadd.s32 1, %s2429_s19 }
   0x9   : > { %p32_p0 = scmp.ge.s32.totalorder %s31_s24, 3  ;;  %s42_s26 = sadd.s32 1, %s2433_s20 }
   0xa   : > { %p147_p1 = scmp.ne.s32.totalorder %s2409_s14, %s2405_s13  ;;  %p148_p2 = scmp.eq.s32.totalorder %s1807_s22, 47 }
   0xb   : > { %s2880_s24 = smov (%p32_p0, %s31_s24), 0  ;;  %s2882_s25 = smov (!%p32_p0, %s38_s25), %s2429_s19 }
   0xc   : > { %2863 = sst [smem:[#allocation8_spill]] %s2880_s24  ;;  %p153_p3 = scmp.ne.s32.totalorder %s2405_s13, %s2401_s12 }
   0xd   : > { %p40_p4 = scmp.ge.s32.totalorder %s2882_s25, 8  ;;  %p154_p5 = scmp.eq.s32.totalorder %s1808_s23, 47 }
   0xe   : > { %p2524_p6 = por %p148_p2, %p147_p1  ;;  %p1812_p8 = scmp.ge.s32.totalorder %s2437_s21, 1 }
   0xf   : > { %s2884_s25 = smov (%p40_p4, %s2882_s25), 0  ;;  %s2886_s26 = smov (!%p40_p4, %s42_s26), %s2433_s20 }
  0x10   : > { %2865 = sst [smem:[#allocation9_spill]] %s2884_s25  ;;  %p2531_p7 = por %p154_p5, %p153_p3 }
  0x11   : > { %p44_p9 = scmp.ge.s32.totalorder %s2886_s26, 2  ;;  %p203_p10 = scmp.lt.s32.totalorder %s2437_s21, 49 }
  0x12   : > { %s131_s29 = ssub.s32 %s2429_s19, %s2884_s25  ;;  %s137_s5 = sadd.s32 1, %s2409_s14 }
  0x13   : > { %s2888_s26 = smov (%p44_p9, %s2886_s26), 0  ;;  %p204_p11 = pnand %p1812_p8, %p203_p10 }
  0x14   : > { %2867 = sst [smem:[#allocation10_spill]] %s2888_s26  ;;  %s130_s30 = ssub.s32 %s2433_s20, %s2888_s26 }
  0x15   : > { %s132_s4 = sor.u32 %s131_s29, %s130_s30  ;;  %207 = sbr.rel (%p204_p11) target bundleno = 366 (0x16e), region = 32 }
  0x16   : > { %p135_p12 = scmp.eq.s32.totalorder %s132_s4, 0  ;;  %s2859_s7 = sand.u32 (!%p204_p11), 1, %s2405_s13  }
  0x17   : > { %s243_s8 = sadd.s32 (!%p204_p11), %s2413_s15, %s2417_s16  ;;  %s1813_s9 = sshll.u32 (!%p204_p11), %s2859_s7, 6 }
  0x18   : > { %s2545_s6 = scalar_select %p135_p12, %s2409_s14, %s137_s5  }
  0x19   : > { %p244_p13 = scmp.lt.s32.totalorder (!%p204_p11), %s2421_s17, 1  ;;  %p246_p0 = scmp.lt.s32.totalorder (!%p204_p11), %s243_s8, 9 }
  0x1a   : > { %p254_p1 = scmp.lt.s32.totalorder (!%p204_p11), %s2413_s15, 2  ;;  %s2566_s19 = scalar_lea.vmem (!%p204_p11), [#allocation3], %s1813_s9 }
  0x1b   : > { %p1816_p2 = scmp.ne.s32.totalorder (!%p204_p11), %s2413_s15, 0 }
  0x1c   : > { %s245_s10 = scalar_select %p244_p13, %s2421_s17, 1 }
  0x1d   : > { %s2890_s8 = smov (!%p246_p0, %s243_s8), 9  ;;  %v1817_v0 = vld [vmem:[%s2854_s2] ss:$0 sm:$0xff] (!%p1816_p2) }
  0x1e   : > { %s2236_s11 = smul.u32 200, %s245_s10  ;;  %276 = vst [vmem:[#allocation2] sm:$0xff] (!%p1816_p2), %v1817_v0  ;;  %277 = vst [vmem:[#allocation2 + $0x8] sm:$0xff] (!%p1816_p2), %v1817_v0 }
  0x1f   : > { %s2235_s22 = smul.u32 20, %s2890_s8  ;;  %278 = vst [vmem:[#allocation2 + $0x10] sm:$0xff] (!%p1816_p2), %v1817_v0  ;;  %279 = vst [vmem:[#allocation2 + $0x18] sm:$0xff] (!%p1816_p2), %v1817_v0 }
  0x20   : > { %s255_s23 = scalar_select %p254_p1, %s2413_s15, 2 }
  0x21   : > { %s250_s29 = sadd.s32 %s2236_s11, %s2235_s22  ;;  %268 = sbr.rel (%p1816_p2) target bundleno = 40 (0x28), region = 36  ;;  %280 = vst [vmem:[#allocation2 + $0x20] sm:$0xff] (!%p1816_p2), %v1817_v0  ;;  %281 = vst [vmem:[#allocation2 + $0x28] sm:$0xff] (!%p1816_p2), %v1817_v0 }
  0x22   : > { %s1814_s30 = sshll.u32 %s250_s29, 3  ;;  %s2237_s4 = smul.u32 36, %s255_s23  ;;  %282 = vst [vmem:[#allocation2 + $0x30] sm:$0xff] (!%p1816_p2), %v1817_v0  ;;  %283 = vst [vmem:[#allocation2 + $0x38] sm:$0xff] (!%p1816_p2), %v1817_v0 }
  0x23   : > { %s2559_s25 = scalar_lea.vmem %s2852_s0, %s1814_s30 }
  0x24   : > { %s2564_s7 = scalar_lea.vmem %s2853_s1, %s2237_s4 }
  0x28 PF: > { %v1818_v1 = vld [vmem:[%s2564_s7 + $0x4] sm:$0xf]  ;;  %vm328_vm0 = vcmask 1043456   ;;  %v2574_v2 = vld [vmem:[%s2564_s7 + $0x10] sm:$0xf]  ;;  %vm303_vm1 = vcmask 31744  }
  0x29   : > { %v293_v3 = vld [vmem:[%s2559_s25 + $0x1] sm:$0xff]  ;;  %2043 = vmatprep.subr.msk.mxu1 %vm328_vm0, %v1818_v1  ;;  %2099 = vmatprep.subr.msk.mxu0 %vm328_vm0, %v2574_v2  ;;  %v1865_v4 = vld [vmem:[%s2559_s25 + $0x11] sm:$0xff]  ;;  %v1927_v17 = vld [vmem:[%s2564_s7 + $0x1c] sm:$0xf]  ;;  %p1955_p3 = scmp.ne.s32.totalorder %s2413_s15, 2 }
  0x2a   : > { %v292_v5 = vld [vmem:[%s2564_s7] sm:$0xf]  ;;  %2044 = vmatpush3.msk.msra.mxu1 %vm328_vm0, %v1818_v1  ;;  %2045 = vmatprep.mubr.msk.f32.mxu1 %vm303_vm1, %v293_v3  ;;  %v1891_v7 = vld [vmem:[%s2564_s7 + $0x14] sm:$0xf]  ;;  %v1909_v9 = vld [vmem:[%s2564_s7 + $0x18] sm:$0xf] }
  0x2b   : > { %v2585_v6 = vld [vmem:[%s2559_s25 + $0x21] sm:$0xff]  ;;  %2100 = vmatpush3.msk.msra.mxu0 %vm328_vm0, %v2574_v2  ;;  %2101 = vmatprep.mubr.msk.f32.mxu0 %vm303_vm1, %v1865_v4  ;;  %v2594_v8 = vld [vmem:[%s2559_s25 + $0x31] sm:$0xff]  ;;  %v1855_v26 = vld [vmem:[%s2564_s7 + $0xc] sm:$0xf] }
  0x2c   : > { %2046 = vmatmul.mubr.msk.f32.vlgmr.msra.gmra.mrb[0].mxu1 %vm303_vm1, %v1865_v4  ;;  %2057 = vmatprep.subr.msk.mxu1 %vm328_vm0, %v292_v5  ;;  %v2603_v10 = vld [vmem:[%s2559_s25 + $0x41] sm:$0xff]  ;;  %v1883_v11 = vld [vmem:[%s2559_s25 + $0x12] sm:$0xff] }
  0x2d   : > { %2102 = vmatmul.mubr.msk.f32.vlgmr.msra.gmra.mrb[0].mxu0 %vm303_vm1, %v2585_v6  ;;  %2113 = vmatprep.subr.msk.mxu0 %vm328_vm0, %v1891_v7  ;;  %v1837_v12 = vld [vmem:[%s2564_s7 + $0x8] sm:$0xf]  ;;  %v2619_v13 = vld [vmem:[%s2559_s25 + $0x51] sm:$0xff]  ;;  %v284_v20 = vld [vmem:[%s2559_s25] sm:$0xff] }
  0x2e   : > { %2058 = vmatpush3.msk.msra.mxu1 %vm328_vm0, %v292_v5  ;;  %2114 = vmatpush3.msk.msra.mxu0 %vm328_vm0, %v1891_v7  ;;  %v2623_v14 = vld [vmem:[%s2559_s25 + $0x22] sm:$0xff]  ;;  %v2630_v16 = vld [vmem:[%s2559_s25 + $0x32] sm:$0xff] }
  0x2f   : > { %2048 = vmatprep.mubr.msk.f32.mxu1 %vm303_vm1, %v2585_v6  ;;  %2104 = vmatprep.mubr.msk.f32.mxu0 %vm303_vm1, %v2594_v8  ;;  %v2626_v15 = vld [vmem:[%s2559_s25 + $0x61] sm:$0xff]  ;;  %v2640_v18 = vld [vmem:[%s2559_s25 + $0x71] sm:$0xff] }
  0x30   : > { %2049 = vmatmul.mubr.msk.f32.gmra.mrb[2].mxu1 %vm303_vm1, %v2594_v8  ;;  %2127 = vmatprep.subr.msk.mxu0 %vm328_vm0, %v1909_v9  ;;  %v2646_v19 = vld [vmem:[%s2559_s25 + $0x42] sm:$0xff]  ;;  %v2650_v21 = vld [vmem:[%s2559_s25 + $0x52] sm:$0xff] }
  0x31   : > { %2105 = vmatmul.mubr.msk.f32.gmra.mrb[2].mxu0 %vm303_vm1, %v2603_v10  ;;  %2051 = vmatprep.mubr.msk.f32.mxu1 %vm303_vm1, %v2603_v10  ;;  %v285_v22 = vld [vmem:[%s2559_s25 + $0x10] sm:$0xff]  ;;  %v2662_v23 = vld [vmem:[%s2559_s25 + $0x62] sm:$0xff]  ;;  %v1624_v53 = vld [vmem:[#allocation2 + $0x18] sm:$0xff] }
  0x32   : > { %2115 = vmatprep.mubr.msk.f32.mxu0 %vm303_vm1, %v1883_v11  ;;  %2071 = vmatprep.subr.msk.mxu1 %vm328_vm0, %v1837_v12  ;;  %v286_v24 = vld [vmem:[%s2559_s25 + $0x20] sm:$0xff]  ;;  %v2666_v25 = vld [vmem:[%s2559_s25 + $0x72] sm:$0xff]  ;;  %v1622_v45 = vld [vmem:[#allocation2 + $0x8] sm:$0xff] }
  0x33   : > { %v287_v27 = vld [vmem:[%s2559_s25 + $0x30] sm:$0xff]  ;;  %v2678_v28 = vld [vmem:[%s2559_s25 + $0x82] sm:$0xff] }
  0x34   : > { %2052 = vmatmul.mubr.msk.f32.gmra.mrb[4].mxu1 %vm303_vm1, %v2619_v13  ;;  %v288_v29 = vld [vmem:[%s2559_s25 + $0x40] sm:$0xff]  ;;  %v289_v30 = vld [vmem:[%s2559_s25 + $0x50] sm:$0xff]  ;;  %v1626_v62 = vld [vmem:[#allocation2 + $0x28] sm:$0xff] }
  0x35   : > { %2116 = vmatmul.mubr.msk.f32.vlgmr.msra.gmra.mrb[0].mxu0 %vm303_vm1, %v2623_v14  ;;  %2054 = vmatprep.mubr.msk.f32.mxu1 %vm303_vm1, %v2626_v15  ;;  %v290_v31 = vld [vmem:[%s2559_s25 + $0x60] sm:$0xff]  ;;  %v291_v33 = vld [vmem:[%s2559_s25 + $0x70] sm:$0xff] }
  0x36   : > { %2128 = vmatpush3.msk.msra.mxu0 %vm328_vm0, %v1909_v9  ;;  %2118 = vmatprep.mubr.msk.f32.mxu0 %vm303_vm1, %v2630_v16  ;;  %v1945_v32 = vld [vmem:[%s2564_s7 + $0x20] sm:$0xf]  ;;  %v1908_v36 = vld [vmem:[%s2559_s25 + $0x90] sm:$0xff] }
  0x37   : > { %2141 = vmatprep.subr.msk.mxu0 %vm328_vm0, %v1927_v17  ;;  %v569_v34 = vld [vmem:[%s2559_s25 + $0x2] sm:$0xff]  ;;  %v1926_v38 = vld [vmem:[%s2559_s25 + $0x91] sm:$0xff] }
  0x38   : > { %2055 = vmatmul.mubr.msk.f32.gmra.mrb[6].mxu1 %vm303_vm1, %v2640_v18  ;;  %v1907_v35 = vld [vmem:[%s2559_s25 + $0x80] sm:$0xff]  ;;  %v1944_v39 = vld [vmem:[%s2559_s25 + $0x92] sm:$0xff] }
  0x39   : > { %2119 = vmatmul.mubr.msk.f32.gmra.mrb[2].mxu0 %vm303_vm1, %v2646_v19  ;;  %2059 = vmatprep.mubr.msk.f32.mxu1 %vm303_vm1, %v284_v20  ;;  %v1925_v37 = vld [vmem:[%s2559_s25 + $0x81] sm:$0xff]  ;;  %v1623_v56 = vld [vmem:[#allocation2 + $0x10] sm:$0xff] }
  0x3a   : > { %2121 = vmatprep.mubr.msk.f32.mxu0 %vm303_vm1, %v2650_v21  ;;  %v1621_v48 = vld [vmem:[#allocation2] sm:$0xff] }
  0x3c   : > { %2060 = vmatmul.mubr.msk.f32.vlgmr.msra.gmra.mrb[0].mxu1 %vm303_vm1, %v285_v22 }
  0x3d   : > { %2122 = vmatmul.mubr.msk.f32.gmra.mrb[4].mxu0 %vm303_vm1, %v2662_v23  ;;  %2072 = vmatpush3.msk.msra.mxu1 %vm328_vm0, %v1837_v12  ;;  %v1627_v12 = vld [vmem:[#allocation2 + $0x30] sm:$0xff] }
  0x3e   : > { %2062 = vmatprep.mubr.msk.f32.mxu1 %vm303_vm1, %v286_v24  ;;  %2124 = vmatprep.mubr.msk.f32.mxu0 %vm303_vm1, %v2666_v25 }
  0x3f   : > { %2085 = vmatprep.subr.msk.mxu1 %vm328_vm0, %v1855_v26 }
  0x40   : > { %2063 = vmatmul.mubr.msk.f32.gmra.mrb[2].mxu1 %vm303_vm1, %v287_v27 }
  0x41   : > { %2125 = vmatmul.mubr.msk.f32.gmra.mrb[6].mxu0 %vm303_vm1, %v2678_v28  ;;  %2065 = vmatprep.mubr.msk.f32.mxu1 %vm303_vm1, %v288_v29 }
  0x42   : > { %2129 = vmatprep.mubr.msk.f32.mxu0 %vm303_vm1, %v286_v24 }
  0x44   : > { %2066 = vmatmul.mubr.msk.f32.gmra.mrb[4].mxu1 %vm303_vm1, %v289_v30 }
  0x45   : > { %2130 = vmatmul.mubr.msk.f32.vlgmr.msra.gmra.mrb[0].mxu0 %vm303_vm1, %v287_v27  ;;  %2068 = vmatprep.mubr.msk.f32.mxu1 %vm303_vm1, %v290_v31 }
  0x46   : > { %2142 = vmatpush3.msk.msra.mxu0 %vm328_vm0, %v1927_v17  ;;  %2132 = vmatprep.mubr.msk.f32.mxu0 %vm303_vm1, %v288_v29 }
  0x47   : > { %2155 = vmatprep.subr.msk.mxu0 %vm328_vm0, %v1945_v32 }
  0x48   : > { %2069 = vmatmul.mubr.msk.f32.gmra.mrb[6].mxu1 %vm303_vm1, %v291_v33 }
  0x49   : > { %2133 = vmatmul.mubr.msk.f32.gmra.mrb[2].mxu0 %vm303_vm1, %v289_v30  ;;  %2073 = vmatprep.mubr.msk.f32.mxu1 %vm303_vm1, %v569_v34 }
  0x4a   : > { %2135 = vmatprep.mubr.msk.f32.mxu0 %vm303_vm1, %v290_v31 }
  0x4c   : > { %2074 = vmatmul.mubr.msk.f32.vlgmr.msra.gmra.mrb[0].mxu1 %vm303_vm1, %v1883_v11 }
  0x4d   : > { %2136 = vmatmul.mubr.msk.f32.gmra.mrb[4].mxu0 %vm303_vm1, %v291_v33  ;;  %2086 = vmatpush3.msk.msra.mxu1 %vm328_vm0, %v1855_v26 }
  0x4e   : > { %2076 = vmatprep.mubr.msk.f32.mxu1 %vm303_vm1, %v2623_v14  ;;  %2138 = vmatprep.mubr.msk.f32.mxu0 %vm303_vm1, %v1907_v35 }
  0x4f   : > { %2169 = vmatprep.subr.msk.mxu1 %vm328_vm0, %v2574_v2 }
  0x50   : > { %2077 = vmatmul.mubr.msk.f32.gmra.mrb[2].mxu1 %vm303_vm1, %v2630_v16 }
  0x51   : > { %2139 = vmatmul.mubr.msk.f32.gmra.mrb[6].mxu0 %vm303_vm1, %v1908_v36  ;;  %2079 = vmatprep.mubr.msk.f32.mxu1 %vm303_vm1, %v2646_v19 }
  0x52   : > { %2143 = vmatprep.mubr.msk.f32.mxu0 %vm303_vm1, %v2585_v6 }
  0x54   : > { %2080 = vmatmul.mubr.msk.f32.gmra.mrb[4].mxu1 %vm303_vm1, %v2650_v21 }
  0x55   : > { %2144 = vmatmul.mubr.msk.f32.vlgmr.msra.gmra.mrb[0].mxu0 %vm303_vm1, %v2594_v8  ;;  %2082 = vmatprep.mubr.msk.f32.mxu1 %vm303_vm1, %v2662_v23  ;;  %v1628_v8 = vld [vmem:[#allocation2 + $0x38] sm:$0xff] }
  0x56   : > { %2156 = vmatpush3.msk.msra.mxu0 %vm328_vm0, %v1945_v32  ;;  %2146 = vmatprep.mubr.msk.f32.mxu0 %vm303_vm1, %v2603_v10 }
  0x58   : > { %2083 = vmatmul.mubr.msk.f32.gmra.mrb[6].mxu1 %vm303_vm1, %v2666_v25 }
  0x59   : > { %2147 = vmatmul.mubr.msk.f32.gmra.mrb[2].mxu0 %vm303_vm1, %v2619_v13  ;;  %2087 = vmatprep.mubr.msk.f32.mxu1 %vm303_vm1, %v285_v22 }
  0x5a   : > { %2149 = vmatprep.mubr.msk.f32.mxu0 %vm303_vm1, %v2626_v15 }
  0x5c   : > { %2088 = vmatmul.mubr.msk.f32.vlgmr.msra.gmra.mrb[0].mxu1 %vm303_vm1, %v286_v24 }
  0x5d   : > { %2150 = vmatmul.mubr.msk.f32.gmra.mrb[4].mxu0 %vm303_vm1, %v2640_v18  ;;  %2170 = vmatpush3.msk.msra.mxu1 %vm328_vm0, %v2574_v2  ;;  %v1625_v2 = vld [vmem:[#allocation2 + $0x20] sm:$0xff] }
  0x5e   : > { %2090 = vmatprep.mubr.msk.f32.mxu1 %vm303_vm1, %v287_v27  ;;  %2152 = vmatprep.mubr.msk.f32.mxu0 %vm303_vm1, %v1925_v37 }
  0x60   : > { %2091 = vmatmul.mubr.msk.f32.gmra.mrb[2].mxu1 %vm303_vm1, %v288_v29 }
  0x61   : > { %2153 = vmatmul.mubr.msk.f32.gmra.mrb[6].mxu0 %vm303_vm1, %v1926_v38  ;;  %2093 = vmatprep.mubr.msk.f32.mxu1 %vm303_vm1, %v289_v30 }
  0x62   : > { %2157 = vmatprep.mubr.msk.f32.mxu0 %vm303_vm1, %v2623_v14 }
  0x64   : > { %2094 = vmatmul.mubr.msk.f32.gmra.mrb[4].mxu1 %vm303_vm1, %v290_v31 }
  0x65   : > { %2158 = vmatmul.mubr.msk.f32.vlgmr.msra.gmra.mrb[0].mxu0 %vm303_vm1, %v2630_v16  ;;  %2096 = vmatprep.mubr.msk.f32.mxu1 %vm303_vm1, %v291_v33 }
  0x66   : > { %2160 = vmatprep.mubr.msk.f32.mxu0 %vm303_vm1, %v2646_v19 }
  0x68   : > { %2097 = vmatmul.mubr.msk.f32.gmra.mrb[6].mxu1 %vm303_vm1, %v1907_v35 }
  0x69   : > { %2161 = vmatmul.mubr.msk.f32.gmra.mrb[2].mxu0 %vm303_vm1, %v2650_v21  ;;  %2107 = vmatprep.mubr.msk.f32.mxu1 %vm303_vm1, %v2619_v13 }
  0x6a   : > { %2163 = vmatprep.mubr.msk.f32.mxu0 %vm303_vm1, %v2662_v23 }
  0x6c   : > { %2108 = vmatmul.mubr.msk.f32.vlgmr.msra.gmra.mrb[4].mxu1 %vm303_vm1, %v2626_v15 }
  0x6d   : > { %2164 = vmatmul.mubr.msk.f32.gmra.mrb[4].mxu0 %vm303_vm1, %v2666_v25  ;;  %2110 = vmatprep.mubr.msk.f32.mxu1 %vm303_vm1, %v2640_v18 }
  0x6e   : > { %2166 = vmatprep.mubr.msk.f32.mxu0 %vm303_vm1, %v2678_v28 }
  0x70   : > { %2111 = vmatmul.mubr.msk.f32.gmra.mrb[6].mxu1 %vm303_vm1, %v1925_v37 }
  0x71   : > { %2167 = vmatmul.mubr.msk.f32.gmra.mrb[6].mxu0 %vm303_vm1, %v1944_v39 }
 0x12f   : > { %v2089_v40 = vpop.f32.mrb[0].mxu1 }
 0x130   : > { %v823_v41 = vpop.f32.mrb[1].mxu1 }
 0x133   : > { %v2092_v42 = vpop.f32.mrb[2].mxu1 }
 0x134   : > { %v833_v43 = vpop.f32.mrb[3].mxu1 }
 0x138   : > { %v2159_v44 = vpop.f32.mrb[0].mxu0 }
 0x139   : > { %v2171_v46 = vadd.f32 %v2159_v44, %v2089_v40  ;;  %v1574_v47 = vpop.f32.mrb[1].mxu0 }
 0x13a   : > { %v2172_v49 = vadd.f32 %v1574_v47, %v823_v41 }
 0x13b   : > { %v1630_v50 = vadd.f32 %v2171_v46, %v1622_v45 }
 0x13c   : > { %v1629_v51 = vadd.f32 %v2172_v49, %v1621_v48  ;;  %v2162_v52 = vpop.f32.mrb[2].mxu0 }
 0x13d   : > { %1638 = vst [vmem:[#allocation2 + $0x8] sm:$0xff] %v1630_v50  ;;  %v2173_v54 = vadd.f32 %v2162_v52, %v2092_v42  ;;  %v1584_v55 = vpop.f32.mrb[3].mxu0 }
 0x13e   : > { %1637 = vst [vmem:[#allocation2] sm:$0xff] %v1629_v51  ;;  %v2174_v57 = vadd.f32 %v1584_v55, %v833_v43 }
 0x13f   : > { %v1632_v58 = vadd.f32 %v2173_v54, %v1624_v53  ;;  %v2109_v59 = vpop.f32.mrb[4].mxu1 }
 0x140   : > { %v1631_v60 = vadd.f32 %v2174_v57, %v1623_v56  ;;  %v2165_v61 = vpop.f32.mrb[4].mxu0  ;;  %v993_v63 = vpop.f32.mrb[5].mxu1 }
 0x141   : > { %1640 = vst [vmem:[#allocation2 + $0x18] sm:$0xff] %v1632_v58  ;;  %v2175_v0 = vadd.f32 %v2165_v61, %v2109_v59  ;;  %v1594_v1 = vpop.f32.mrb[5].mxu0 }
 0x142   : > { %1639 = vst [vmem:[#allocation2 + $0x10] sm:$0xff] %v1631_v60  ;;  %v2176_v3 = vadd.f32 %v1594_v1, %v993_v63 }
 0x143   : > { %v1634_v4 = vadd.f32 %v2175_v0, %v1626_v62  ;;  %v2112_v5 = vpop.f32.mrb[6].mxu1 }
 0x144   : > { %v1633_v6 = vadd.f32 %v2176_v3, %v1625_v2  ;;  %v2168_v7 = vpop.f32.mrb[6].mxu0  ;;  %v1003_v9 = vpop.f32.mrb[7].mxu1  ;;  %1648 = sbr.rel (%p1955_p3) target bundleno = 339 (0x153), region = 40  ;;  %v1650_v17 = vld [vmem:[#allocation2 + $0x8] sm:$0xff] (!%p1955_p3) }
 0x145   : > { %1642 = vst [vmem:[#allocation2 + $0x28] sm:$0xff] %v1634_v4  ;;  %v2177_v10 = vadd.f32 %v2168_v7, %v2112_v5  ;;  %v1604_v11 = vpop.f32.mrb[7].mxu0  ;;  %v1649_v16 = vld [vmem:[#allocation2] sm:$0xff] (!%p1955_p3)  ;;  %1658 = vst [vmem:[%s2566_s19 + $0x8] sm:$0xff] (!%p1955_p3), %v1650_v17 }
 0x146   : > { %1641 = vst [vmem:[#allocation2 + $0x20] sm:$0xff] %v1633_v6  ;;  %v2178_v13 = vadd.f32 %v1604_v11, %v1003_v9  ;;  %1657 = vst [vmem:[%s2566_s19] sm:$0xff] (!%p1955_p3), %v1649_v16 }
 0x147   : > { %v1636_v14 = vadd.f32 %v2177_v10, %v1628_v8 }
 0x148   : > { %v1635_v15 = vadd.f32 %v2178_v13, %v1627_v12  ;;  %v1652_v19 = vld [vmem:[#allocation2 + $0x18] sm:$0xff] (!%p1955_p3) }
 0x149   : > { %1644 = vst [vmem:[#allocation2 + $0x38] sm:$0xff] %v1636_v14  ;;  %v1651_v18 = vld [vmem:[#allocation2 + $0x10] sm:$0xff] (!%p1955_p3)  ;;  %1660 = vst [vmem:[%s2566_s19 + $0x18] sm:$0xff] (!%p1955_p3), %v1652_v19 }
 0x14a   : > { %1643 = vst [vmem:[#allocation2 + $0x30] sm:$0xff] %v1635_v15  ;;  %1659 = vst [vmem:[%s2566_s19 + $0x10] sm:$0xff] (!%p1955_p3), %v1651_v18 }
 0x14c   : > { %v1654_v21 = vld [vmem:[#allocation2 + $0x28] sm:$0xff] }
 0x14d   : > { %v1653_v20 = vld [vmem:[#allocation2 + $0x20] sm:$0xff]  ;;  %1662 = vst [vmem:[%s2566_s19 + $0x28] sm:$0xff] %v1654_v21 }
 0x14e   : > { %1661 = vst [vmem:[%s2566_s19 + $0x20] sm:$0xff] %v1653_v20 }
 0x150   : > { %v1656_v23 = vld [vmem:[#allocation2 + $0x38] sm:$0xff] }
 0x151   : > { %v1655_v22 = vld [vmem:[#allocation2 + $0x30] sm:$0xff]  ;;  %1664 = vst [vmem:[%s2566_s19 + $0x38] sm:$0xff] %v1656_v23 }
 0x152   : > { %1663 = vst [vmem:[%s2566_s19 + $0x30] sm:$0xff] %v1655_v22 }
 0x153 PF: > { %s1957_s15 = sshll.u32 %s2417_s16, 3  ;;  %s1958_s20 = sshll.u32 %s2421_s17, 6 }
 0x154   : > { %s1682_s24 = sshll.u32 %s2566_s19, 4  ;;  %s1679_s25 = sadd.s32 %s1958_s20, %s1957_s15  ;;  %s2785_s24 = int_to_ptr.vmem [resolvable:$true] %s1682_s24 }
 0x155   : > { %s1959_s26 = sshll.u32 %s1679_s25, 7  ;;  %s2868_s22 = sand.u32 1, %s2405_s13  }
 0x156   : > { %s2790_s11 = scalar_lea.hbm %s2855_s3, %s1959_s26  ;;  %s2794_s23 = scalar_lea.sflag [#allocation4], %s2868_s22 }
 0x157   : > { %s2327_s29 = scalar_lea.vmem %s2785_s24, 1024  ;;  %s2439_s16 = smov [#allocation3]  }
 0x158   : > { %p2328_p4 = scmp.ne.s32.totalorder %s2785_s24, %s2327_s29  ;;  %s2331_s17 = sshll.u32 %s2439_s16, 4  ;;  %s2332_s17 = int_to_ptr.vmem [resolvable:$false] %s2331_s17 }
 0x159   : > { %s2333_s19 = scalar_lea.vmem %s2332_s17, 2048  ;;  %p2334_p9 = scmp.lt.s32.totalorder %s2785_s24, %s2332_s17 }
 0x15a   : > { %p2329_p5 = pnand %p2328_p4, %p2524_p6  ;;  %p2335_p10 = scmp.lt.s32.totalorder %s2333_s19, %s2327_s29 }
 0x15c   : > { %p2330_p8 = pneg %p2329_p5  ;;  %p2336_p11 = por %p2335_p10, %p2334_p9 }
 0x15e   : > { %p2337_p12 = pnand %p2336_p11, %p2330_p8 }
 0x160   : > { %2340 = shalt.err (!%p2337_p12)
}
 0x161   : > { %s2341_s30 = scalar_lea.hbm %s2790_s11, 1024  ;;  %s2345_s8 = scalar_lea.hbm %s2855_s3, 16384 }
 0x162   : > { %p2342_p13 = scmp.ne.s32.totalorder %s2790_s11, %s2341_s30  ;;  %p2346_p2 = scmp.lt.u32.totalorder %s2790_s11, %s2855_s3 }
 0x163   : > { %p2347_p3 = scmp.lt.u32.totalorder %s2345_s8, %s2341_s30  ;;  %p2349_p5 = scmp.lt.u32.totalorder %s2341_s30, %s2790_s11 }
 0x164   : > { %p2343_p0 = pnand %p2342_p13, %p2524_p6 }
 0x165   : > { %p2348_p4 = por %p2347_p3, %p2346_p2 }
 0x166   : > { %p2344_p1 = pneg %p2343_p0 }
 0x167   : > { %p2350_p8 = por %p2349_p5, %p2348_p4 }
 0x169   : > { %p2351_p9 = pnand %p2350_p8, %p2344_p1 }
 0x16b   : > { %2354 = shalt.err (!%p2351_p9)
}
 0x16c   : > { %s2440_s20 = smov 128   ;;  %s2441_s25 = smov 8  }
 0x16d   : > { %2238 = dma.vmem_to_hbm [thread:$0]  (%p2524_p6), %s2785_s24, 1024, %s2790_s11, %s2794_s23, %s2440_s20, %s2440_s20, %s2441_s25  }
 0x16e PF: > { %p2244_p10 = scmp.ge.s32.totalorder %s2437_s21, 2  ;;  %s1697_s26 = sand.u32 1, %s2401_s12  }
 0x16f   : > { %s1698_s7 = scalar_lea.sflag [#allocation4], %s1697_s26 }
 0x170   : > { %p2241_p11 = pnand %p2244_p10, %p2531_p7 }
 0x172   : > { %2396 = dma.done.wait (!%p2241_p11), %s1698_s7, 1024  }
 0x173   : > { %2398 = vsyncadd (!%p2241_p11), %s1698_s7, 4294966272  ;;  %s16_s21 = sadd.s32 1, %s2437_s21   ;;  %s2869_s16 = sld [smem:[#allocation6_spill]] }
 0x174   : > { %p13_p12 = scmp.ge.s32.totalorder %s16_s21, 50   ;;  %s2870_s17 = sld [smem:[#allocation7_spill]] }
 0x175   : > { %s2871_s27 = sld [smem:[#allocation8_spill]]  ;;  %s2872_s19 = sld [smem:[#allocation9_spill]] }
 0x176   : > { %s2873_s20 = sld [smem:[#allocation10_spill]]  ;;  %s2874_s12 = smov %s2405_s13 }
 0x177   : > { %s2875_s13 = smov %s2409_s14  ;;  %s2876_s14 = smov %s2545_s6 }
 0x178   : > { %s2877_s15 = smov %s2425_s18  ;;  %15 = sbr.rel (!%p13_p12) target bundleno = 6 (0x6), region = 91 }
 0x17b   : > { %s2878_s18 = smov %s2871_s27 }
 0x17f   :  { %1703 = vsyncpa [#allocation4], 1 }
 0x180   :  { %1705 = vsyncpa [#allocation4 + $0x1], 1 }

</bundles_post_ra>
